<compile_context>
chip_gen: v7x
topology: tpu7x:2x2x1
jax: 0.10.0
libtpu: 0.0.40
codegen_flags: <defaults>
</compile_context>

<pallas_src>
import numpy as np
import jax
import jax.numpy as jnp
from jax.experimental import pallas as pl
from jax.experimental.pallas import tpu as pltpu

LANE = 128  # TPU vreg lane width


# ----------------------------------------------------------------------------
# Parameter / center construction (plain JAX "glue", deterministic)
# ----------------------------------------------------------------------------
def build_centers(n_centers):
    """Reproduces RBF.__init__ center construction (torch.meshgrid 'ij')."""
    out_features = int(np.sum(n_centers))
    centers = np.zeros((out_features, 2), dtype=np.float32)
    offset = 0
    for n in n_centers:
        k = np.linspace(0.0, 1.0, int(np.sqrt(n)), dtype=np.float32)
        s1, s2 = np.meshgrid(k, k, indexing="ij")
        knots = np.column_stack((s1.flatten(), s2.flatten()))
        centers[offset:offset + knots.shape[0], :] = knots
        offset += n
    return jnp.asarray(centers)  # (F, 2)


def build_mlp_params(key, in_features, num_layers, hidden_size, output_size):
    """Deterministic init of the (lazy) linear layers: num_layers hidden + 1 output."""
    params = []
    fan_in = in_features
    for _ in range(num_layers):
        key, kw, kb = jax.random.split(key, 3)
        scale = 1.0 / np.sqrt(fan_in)
        w = jax.random.uniform(kw, (fan_in, hidden_size), jnp.float32, -scale, scale)
        b = jax.random.uniform(kb, (1, hidden_size), jnp.float32, -scale, scale)
        params.append((w, b))
        fan_in = hidden_size
    key, kw, kb = jax.random.split(key, 3)
    scale = 1.0 / np.sqrt(fan_in)
    wo = jax.random.uniform(kw, (fan_in, output_size), jnp.float32, -scale, scale)
    bo = jax.random.uniform(kb, (1, output_size), jnp.float32, -scale, scale)
    return params, (wo, bo)


# ----------------------------------------------------------------------------
# Pallas kernel: RBF expansion + MLP forward, fused, one batch-tile per grid step
# ----------------------------------------------------------------------------
def make_rbfnet_kernel(num_hidden_layers, vpu_head):
    def kernel(*refs):
        x_ref, c_ref = refs[0], refs[1]     # x: (TB, 2) f32, c: (2, F_pad) f32
        out_ref = refs[-1]                  # (TB, 1) if vpu_head else (TB, O_pad)
        param_refs = refs[2:-1]             # W0,b0, ..., W_{L-1},b_{L-1}, Wo, bo

        x = x_ref[...]                      # (TB, 2)
        c = c_ref[...]                      # (2, F_pad)

        # ---- RBF features: phi = (1-d)^6 * (35 d^2 + 18 d + 3)  (the /3 factor
        #      is folded into W0 by the wrapper).  Explicit squaring chain keeps
        #      this a VPU multiply chain; sqrt goes to the EUP slot. -----------
        dx = x[:, 0:1] - c[0:1, :]          # (TB, F_pad)
        dy = x[:, 1:2] - c[1:2, :]          # (TB, F_pad)
        d2 = dx * dx + dy * dy
        d = jnp.sqrt(d2)                    # torch.norm(x - centers, dim=2)
        t = 1.0 - d
        t2 = t * t
        phi = (t2 * t2 * t2) * (35.0 * d2 + 18.0 * d + 3.0)   # f32

        # ---- hidden layers: bf16 MXU matmuls with f32 accumulation ----------
        h = phi
        for li in range(num_hidden_layers):
            w = param_refs[2 * li][...]           # bf16 (in_pad, H_pad)
            b = param_refs[2 * li + 1][...]       # f32  (1, H_pad)
            h = jnp.maximum(
                jnp.dot(h.astype(w.dtype), w, preferred_element_type=jnp.float32) + b,
                0.0,
            )

        wo = param_refs[-2][...]
        bo = param_refs[-1][...]
        if vpu_head:
            # O == 1: VPU multiply + XLU lane-reduce instead of a 128-lane-padded
            # MXU pass; result is the narrow (TB, 1) column we actually store.
            out_ref[...] = jnp.sum(h * wo, axis=-1, keepdims=True) + bo
        else:
            # General O fallback: lane-padded MXU head.
            out_ref[...] = (
                jnp.dot(h.astype(wo.dtype), wo, preferred_element_type=jnp.float32) + bo
            )

    return kernel


def _round_up(n, m):
    return ((n + m - 1) // m) * m


def _cdiv(a, b):
    return -(-a // b)


def rbfnet_forward(x, centers, hidden_params, out_params, *, tb=2048):
    """x: (B, 2) float32.  Returns (B, output_size) float32."""
    num_hidden = len(hidden_params)
    assert num_hidden >= 1  # MLP asserts num_layers >= 1
    B = x.shape[0]
    F_real = centers.shape[0]
    H = hidden_params[0][0].shape[1]
    O = out_params[0].shape[1]
    vpu_head = (O == 1)

    # --- lane-aligned padded sizes (zero padding keeps the math exact) --------
    F_pad = _round_up(F_real, LANE)
    H_pad = _round_up(H, LANE)

    # --- batch tiling: TB multiple of 8 (f32 sublanes); guarantee >=2 tiles
    #     whenever B > 8 so both v7x TensorCores get work under "parallel". -----
    TB = min(int(tb), max(_round_up(_cdiv(B, 2), 8), 8))
    TB = _round_up(TB, 8)
    B_pad = _round_up(B, TB)
    n_tiles = B_pad // TB

    x_p = jnp.zeros((B_pad, 2), jnp.float32).at[:B].set(x)

    # centers -> coordinate-major (2, F_pad); padded "centers" sit at the origin,
    # their phi contribution is killed by the zeroed rows of W0.
    c_t = jnp.zeros((2, F_pad), jnp.float32).at[:, :F_real].set(centers.T)

    # --- pad weights/biases; fold the RBF 1/3 factor into W0; cast the MXU
    #     operands (hidden weights) to bf16 once here ---------------------------
    flat_params = []
    fan_in_real, fan_in_pad = F_real, F_pad
    for li, (w, b) in enumerate(hidden_params):
        s = (1.0 / 3.0) if li == 0 else 1.0
        w_p = jnp.zeros((fan_in_pad, H_pad), jnp.float32).at[:fan_in_real, :H].set(w * s)
        b_p = jnp.zeros((1, H_pad), jnp.float32).at[:, :H].set(b)
        flat_params += [w_p.astype(jnp.bfloat16), b_p]
        fan_in_real, fan_in_pad = H, H_pad

    wo, bo = out_params
    if vpu_head:
        # Wo as an f32 (1, H_pad) row for the VPU row-dot; narrow (B_pad, 1) output.
        wo_row = jnp.zeros((1, H_pad), jnp.float32).at[:, :fan_in_real].set(wo.T)
        bo_p = jnp.asarray(bo, jnp.float32).reshape(1, 1)
        flat_params += [wo_row, bo_p]
        out_cols = 1
    else:
        O_pad = _round_up(O, LANE)
        wo_p = jnp.zeros((fan_in_pad, O_pad), jnp.float32).at[:fan_in_real, :O].set(wo)
        bo_p = jnp.zeros((1, O_pad), jnp.float32).at[:, :O].set(bo)
        flat_params += [wo_p.astype(jnp.bfloat16), bo_p]
        out_cols = O_pad

    # --- BlockSpecs: x/out tiled over the batch grid; everything else resident -
    x_spec = pl.BlockSpec((TB, 2), lambda i: (i, 0))
    c_spec = pl.BlockSpec((2, F_pad), lambda i: (0, 0))
    param_specs = [pl.BlockSpec(p.shape, lambda i: (0, 0)) for p in flat_params]
    out_spec = pl.BlockSpec((TB, out_cols), lambda i: (i, 0))

    out_padded = pl.pallas_call(
        make_rbfnet_kernel(num_hidden, vpu_head),
        out_shape=jax.ShapeDtypeStruct((B_pad, out_cols), jnp.float32),
        grid_spec=pltpu.PrefetchScalarGridSpec(
            num_scalar_prefetch=0,
            grid=(n_tiles,),
            in_specs=[x_spec, c_spec] + param_specs,
            out_specs=out_spec,
        ),
        compiler_params=pltpu.CompilerParams(
            dimension_semantics=("parallel",),          # megacore sharding on v7x
            vmem_limit_bytes=32 * 1024 * 1024,          # fits v5e/v6e/v7x budgets
        ),
    )(x_p, c_t, *flat_params)

    return out_padded[:B, :O]


# ----------------------------------------------------------------------------
# Pure-JAX references
# ----------------------------------------------------------------------------
def rbfnet_reference(x, centers, hidden_params, out_params):
    """Exact f32 mirror of the PyTorch forward."""
    diff = x[:, None, :] - centers[None, :, :]          # (B, F, 2)
    d = jnp.linalg.norm(diff, axis=2)                   # (B, F)
    h = ((1.0 - d) ** 6) * (35.0 * d ** 2 + 18.0 * d + 3.0) / 3.0
    for (w, b) in hidden_params:
        h = jnp.maximum(h @ w + b, 0.0)
    wo, bo = out_params
    return h @ wo + bo


def rbfnet_reference_bf16_matched(x, centers, hidden_params, out_params):
    """Mirrors the kernel's numerics (bf16 dot operands, f32 accumulate, folded 1/3)."""
    diff = x[:, None, :] - centers[None, :, :]
    d2 = jnp.sum(diff * diff, axis=2)
    d = jnp.sqrt(d2)
    t = 1.0 - d
    t2 = t * t
    h = (t2 * t2 * t2) * (35.0 * d2 + 18.0 * d + 3.0)
    for li, (w, b) in enumerate(hidden_params):
        s = (1.0 / 3.0) if li == 0 else 1.0
        wq = (w * s).astype(jnp.bfloat16)
        h = jnp.maximum(
            jnp.dot(h.astype(jnp.bfloat16), wq, preferred_element_type=jnp.float32) + b,
            0.0,
        )
    wo, bo = out_params
    return jnp.sum(h * wo[:, 0][None, :], axis=-1, keepdims=True) + bo


if __name__ == "__main__":
    # Small, module-consistent configuration.
    n_centers = [16, 64]          # perfect squares, out_features F = 80
    num_layers = 2                # hidden layers
    hidden_size = 32
    output_size = 1
    batch = 20                    # NOT a multiple of the tile -> tests padding; 2 tiles

    centers = build_centers(n_centers)                          # (80, 2)
    key = jax.random.PRNGKey(0)
    key, kx = jax.random.split(key)
    x = jax.random.uniform(kx, (batch, 2), jnp.float32)         # points in [0,1]^2

    hidden_params, out_params = build_mlp_params(
        key, int(np.sum(n_centers)), num_layers, hidden_size, output_size
    )

    out = rbfnet_forward(x, centers, hidden_params, out_params)
    out = jax.block_until_ready(out)

    # Tight check against a reference that mirrors the kernel's bf16 matmul numerics.
    ref_bf16 = rbfnet_reference_bf16_matched(x, centers, hidden_params, out_params)
    np.testing.assert_allclose(np.asarray(out), np.asarray(ref_bf16), rtol=2e-3, atol=2e-3)

    # Looser check against the exact f32 PyTorch-equivalent forward (tolerance
    # deliberately relaxed because the kernel uses bf16 MXU operands).
    ref = rbfnet_reference(x, centers, hidden_params, out_params)
    np.testing.assert_allclose(np.asarray(out), np.asarray(ref), rtol=5e-2, atol=5e-2)

    print("KERNEL_OK")
</pallas_src>

<mosaic_0001>
module attributes {stable_mosaic.version = 11 : i64} {
  func.func @kernel(%arg0: i32, %arg1: memref<16x2xf32, #tpu.memory_space<vmem>>, %arg2: memref<2x128xf32, #tpu.memory_space<vmem>>, %arg3: memref<128x128xbf16, #tpu.memory_space<vmem>>, %arg4: memref<1x128xf32, #tpu.memory_space<vmem>>, %arg5: memref<128x128xbf16, #tpu.memory_space<vmem>>, %arg6: memref<1x128xf32, #tpu.memory_space<vmem>>, %arg7: memref<1x128xf32, #tpu.memory_space<vmem>>, %arg8: memref<1x1xf32, #tpu.memory_space<vmem>>, %arg9: memref<16x1xf32, #tpu.memory_space<vmem>>) attributes {dimension_semantics = [#tpu.dimension_semantics<parallel>], iteration_bounds = array<i64: 2>, scalar_prefetch = 0 : i64, scratch_operands = 0 : i64, tpu.core_type = #tpu.core_type<tc>, window_params = [{transform_indices = @transform_0, window_bounds = array<i64: 16, 2>}, {pipeline_mode = #tpu.pipeline_mode<synchronous>, transform_indices = @transform_1, window_bounds = array<i64: 2, 128>}, {pipeline_mode = #tpu.pipeline_mode<synchronous>, transform_indices = @transform_2, window_bounds = array<i64: 128, 128>}, {pipeline_mode = #tpu.pipeline_mode<synchronous>, transform_indices = @transform_3, window_bounds = array<i64: 1, 128>}, {pipeline_mode = #tpu.pipeline_mode<synchronous>, transform_indices = @transform_4, window_bounds = array<i64: 128, 128>}, {pipeline_mode = #tpu.pipeline_mode<synchronous>, transform_indices = @transform_5, window_bounds = array<i64: 1, 128>}, {pipeline_mode = #tpu.pipeline_mode<synchronous>, transform_indices = @transform_6, window_bounds = array<i64: 1, 128>}, {pipeline_mode = #tpu.pipeline_mode<synchronous>, transform_indices = @transform_7, window_bounds = array<i64: 1, 1>}, {transform_indices = @transform_8, window_bounds = array<i64: 16, 1>}]} {
    %c0 = arith.constant 0 : index
    %c0_0 = arith.constant 0 : index
    %0 = vector.load %arg1[%c0, %c0_0] : memref<16x2xf32, #tpu.memory_space<vmem>>, vector<16x2xf32>
    %c0_1 = arith.constant 0 : index
    %c0_2 = arith.constant 0 : index
    %1 = vector.load %arg2[%c0_1, %c0_2] : memref<2x128xf32, #tpu.memory_space<vmem>>, vector<2x128xf32>
    %2 = vector.extract_strided_slice %0 {offsets = [0, 0], sizes = [16, 1], strides = [1, 1]} : vector<16x2xf32> to vector<16x1xf32>
    %3 = vector.extract_strided_slice %1 {offsets = [0, 0], sizes = [1, 128], strides = [1, 1]} : vector<2x128xf32> to vector<1x128xf32>
    %4 = vector.broadcast %2 : vector<16x1xf32> to vector<16x128xf32>
    %5 = vector.broadcast %3 : vector<1x128xf32> to vector<16x128xf32>
    %6 = arith.subf %4, %5 : vector<16x128xf32>
    %7 = vector.extract_strided_slice %0 {offsets = [0, 1], sizes = [16, 1], strides = [1, 1]} : vector<16x2xf32> to vector<16x1xf32>
    %8 = vector.extract_strided_slice %1 {offsets = [1, 0], sizes = [1, 128], strides = [1, 1]} : vector<2x128xf32> to vector<1x128xf32>
    %9 = vector.broadcast %7 : vector<16x1xf32> to vector<16x128xf32>
    %10 = vector.broadcast %8 : vector<1x128xf32> to vector<16x128xf32>
    %11 = arith.subf %9, %10 : vector<16x128xf32>
    %12 = arith.mulf %6, %6 : vector<16x128xf32>
    %13 = arith.mulf %11, %11 : vector<16x128xf32>
    %14 = arith.addf %12, %13 : vector<16x128xf32>
    %15 = math.sqrt %14 : vector<16x128xf32>
    %cst = arith.constant 1.000000e+00 : f32
    %16 = vector.broadcast %cst : f32 to vector<16x128xf32>
    %17 = arith.subf %16, %15 : vector<16x128xf32>
    %18 = arith.mulf %17, %17 : vector<16x128xf32>
    %19 = arith.mulf %18, %18 : vector<16x128xf32>
    %20 = arith.mulf %19, %18 : vector<16x128xf32>
    %cst_3 = arith.constant 3.500000e+01 : f32
    %21 = vector.broadcast %cst_3 : f32 to vector<16x128xf32>
    %22 = arith.mulf %21, %14 : vector<16x128xf32>
    %cst_4 = arith.constant 1.800000e+01 : f32
    %23 = vector.broadcast %cst_4 : f32 to vector<16x128xf32>
    %24 = arith.mulf %23, %15 : vector<16x128xf32>
    %25 = arith.addf %22, %24 : vector<16x128xf32>
    %cst_5 = arith.constant 3.000000e+00 : f32
    %26 = vector.broadcast %cst_5 : f32 to vector<16x128xf32>
    %27 = arith.addf %25, %26 : vector<16x128xf32>
    %28 = arith.mulf %20, %27 : vector<16x128xf32>
    %c0_6 = arith.constant 0 : index
    %c0_7 = arith.constant 0 : index
    %29 = vector.load %arg3[%c0_6, %c0_7] : memref<128x128xbf16, #tpu.memory_space<vmem>>, vector<128x128xbf16>
    %c0_8 = arith.constant 0 : index
    %c0_9 = arith.constant 0 : index
    %30 = vector.load %arg4[%c0_8, %c0_9] : memref<1x128xf32, #tpu.memory_space<vmem>>, vector<1x128xf32>
    %31 = arith.truncf %28 : vector<16x128xf32> to vector<16x128xbf16>
    %cst_10 = arith.constant dense<0.000000e+00> : vector<16x128xf32>
    %32 = tpu.matmul %31, %29, %cst_10 {dimension_numbers = #tpu.dot_dimension_numbers<[1], [0], [0], [1], [0, 0, 1, 1], [], []>} : vector<16x128xbf16>, vector<128x128xbf16>, vector<16x128xf32> -> vector<16x128xf32>
    %33 = vector.broadcast %30 : vector<1x128xf32> to vector<16x128xf32>
    %34 = arith.addf %32, %33 : vector<16x128xf32>
    %cst_11 = arith.constant 0.000000e+00 : f32
    %35 = vector.broadcast %cst_11 : f32 to vector<16x128xf32>
    %36 = arith.maximumf %34, %35 : vector<16x128xf32>
    %c0_12 = arith.constant 0 : index
    %c0_13 = arith.constant 0 : index
    %37 = vector.load %arg5[%c0_12, %c0_13] : memref<128x128xbf16, #tpu.memory_space<vmem>>, vector<128x128xbf16>
    %c0_14 = arith.constant 0 : index
    %c0_15 = arith.constant 0 : index
    %38 = vector.load %arg6[%c0_14, %c0_15] : memref<1x128xf32, #tpu.memory_space<vmem>>, vector<1x128xf32>
    %39 = arith.truncf %36 : vector<16x128xf32> to vector<16x128xbf16>
    %cst_16 = arith.constant dense<0.000000e+00> : vector<16x128xf32>
    %40 = tpu.matmul %39, %37, %cst_16 {dimension_numbers = #tpu.dot_dimension_numbers<[1], [0], [0], [1], [0, 0, 1, 1], [], []>} : vector<16x128xbf16>, vector<128x128xbf16>, vector<16x128xf32> -> vector<16x128xf32>
    %41 = vector.broadcast %38 : vector<1x128xf32> to vector<16x128xf32>
    %42 = arith.addf %40, %41 : vector<16x128xf32>
    %cst_17 = arith.constant 0.000000e+00 : f32
    %43 = vector.broadcast %cst_17 : f32 to vector<16x128xf32>
    %44 = arith.maximumf %42, %43 : vector<16x128xf32>
    %c0_18 = arith.constant 0 : index
    %c0_19 = arith.constant 0 : index
    %45 = vector.load %arg7[%c0_18, %c0_19] : memref<1x128xf32, #tpu.memory_space<vmem>>, vector<1x128xf32>
    %c0_20 = arith.constant 0 : index
    %c0_21 = arith.constant 0 : index
    %46 = vector.load %arg8[%c0_20, %c0_21] : memref<1x1xf32, #tpu.memory_space<vmem>>, vector<1x1xf32>
    %47 = vector.broadcast %45 : vector<1x128xf32> to vector<16x128xf32>
    %48 = arith.mulf %44, %47 : vector<16x128xf32>
    %cst_22 = arith.constant dense<0.000000e+00> : vector<16xf32>
    %49 = vector.multi_reduction <add>, %48, %cst_22 [1] : vector<16x128xf32> to vector<16xf32>
    %50 = vector.shape_cast %49 : vector<16xf32> to vector<16x1xf32>
    %51 = vector.broadcast %46 : vector<1x1xf32> to vector<16x1xf32>
    %52 = arith.addf %50, %51 : vector<16x1xf32>
    %c0_23 = arith.constant 0 : index
    %c0_24 = arith.constant 0 : index
    %53 = vector.load %arg9[%c0_23, %c0_24] : memref<16x1xf32, #tpu.memory_space<vmem>>, vector<16x1xf32>
    tpu.vector_store %arg9[%c0_23, %c0_24], %52 {strides = array<i32>} : memref<16x1xf32, #tpu.memory_space<vmem>>, vector<16x1xf32>,
    return
  }
  func.func @transform_0(%arg0: i32) -> (i32, i32) {
    %c0_i32 = arith.constant 0 : i32
    %c0_i32_0 = arith.constant 0 : i32
    return %arg0, %c0_i32 : i32, i32
  }
  func.func @transform_1(%arg0: i32) -> (i32, i32) {
    %c0_i32 = arith.constant 0 : i32
    %c0_i32_0 = arith.constant 0 : i32
    %c0_i32_1 = arith.constant 0 : i32
    return %c0_i32, %c0_i32_0 : i32, i32
  }
  func.func @transform_2(%arg0: i32) -> (i32, i32) {
    %c0_i32 = arith.constant 0 : i32
    %c0_i32_0 = arith.constant 0 : i32
    %c0_i32_1 = arith.constant 0 : i32
    return %c0_i32, %c0_i32_0 : i32, i32
  }
  func.func @transform_3(%arg0: i32) -> (i32, i32) {
    %c0_i32 = arith.constant 0 : i32
    %c0_i32_0 = arith.constant 0 : i32
    %c0_i32_1 = arith.constant 0 : i32
    return %c0_i32, %c0_i32_0 : i32, i32
  }
  func.func @transform_4(%arg0: i32) -> (i32, i32) {
    %c0_i32 = arith.constant 0 : i32
    %c0_i32_0 = arith.constant 0 : i32
    %c0_i32_1 = arith.constant 0 : i32
    return %c0_i32, %c0_i32_0 : i32, i32
  }
  func.func @transform_5(%arg0: i32) -> (i32, i32) {
    %c0_i32 = arith.constant 0 : i32
    %c0_i32_0 = arith.constant 0 : i32
    %c0_i32_1 = arith.constant 0 : i32
    return %c0_i32, %c0_i32_0 : i32, i32
  }
  func.func @transform_6(%arg0: i32) -> (i32, i32) {
    %c0_i32 = arith.constant 0 : i32
    %c0_i32_0 = arith.constant 0 : i32
    %c0_i32_1 = arith.constant 0 : i32
    return %c0_i32, %c0_i32_0 : i32, i32
  }
  func.func @transform_7(%arg0: i32) -> (i32, i32) {
    %c0_i32 = arith.constant 0 : i32
    %c0_i32_0 = arith.constant 0 : i32
    %c0_i32_1 = arith.constant 0 : i32
    return %c0_i32, %c0_i32_0 : i32, i32
  }
  func.func @transform_8(%arg0: i32) -> (i32, i32) {
    %c0_i32 = arith.constant 0 : i32
    %c0_i32_0 = arith.constant 0 : i32
    return %arg0, %c0_i32 : i32, i32
  }
}

</mosaic_0001>

<bundles_post_ra>
// kernel: tpu_custom_call.1
= control target key start
LH: loop header
LB: loop body
LE: loop exit
PB: predicated region body
PF: predicated region fallthrough
CT: control target
= control target key end

     0   :  { %s1158_s0 = inlined_call_operand.vmem [shape: f32[32,2], index: 0, kind: input, shape index: {}]   ;;  %s1159_s1 = inlined_call_operand.vmem [shape: f32[2,128], index: 1, kind: input, shape index: {}]   ;;  %s1160_s2 = inlined_call_operand.hbm [shape: bf16[128,128], index: 2, kind: input, shape index: {}]   ;;  %s1161_s3 = inlined_call_operand.vmem [shape: f32[1,128], index: 3, kind: input, shape index: {}]   ;;  %s1162_s4 = inlined_call_operand.hbm [shape: bf16[128,128], index: 4, kind: input, shape index: {}]   ;;  %s1163_s5 = inlined_call_operand.vmem [shape: f32[1,128], index: 5, kind: input, shape index: {}]   ;;  %s1164_s6 = inlined_call_operand.vmem [shape: f32[1,128], index: 6, kind: input, shape index: {}]   ;;  %s1165_s7 = inlined_call_operand.<no memory space> [shape: f32[1,1], index: 7, kind: input, shape index: {}]   ;;  %s1166_s8 = inlined_call_operand.vmem [shape: f32[32,1], index: 8, kind: output, shape index: {}]  }
   0x1   :  { %v13_v0 = vstv %s1165_s7 }
   0x2   :  { %14 = vst [vmem:[#allocation2] sm:$0x1] %v13_v0 }
   0x3   :  { %15 = vsyncpa [#allocation4], 0 }
   0x4   :  { %16 = vsyncpa [#allocation6], 0  ;;  %s1025_s29 = smov 0  }
   0x5 LB: > { %s746_s30 = sadd.s32 4294967295, %s967_s29   ;;  %p748_p0 = scmp.ge.s32.totalorder %s967_s29, 1  ;;  %s967_s29 = sphi %s1025_s29, %s22_s29  }
   0x6   : > { %p226_p1 = scmp.lt.s32.totalorder %s967_s29, 3  ;;  %s969_s9 = smov [#allocation3]  }
   0x7   : > { %s241_s10 = sshll.u32 %s969_s9, 4  ;;  %p1039_p3 = scmp.eq.s32.totalorder %s746_s30, 0  ;;  %s242_s10 = int_to_ptr.vmem [resolvable:$true] %s241_s10 }
   0x8   : > { %p1033_p2 = pnand %p748_p0, %p226_p1  ;;  %s970_s12 = smov [#allocation5]  }
   0x9   : > { %s1171_s11 = scalar_select %p1039_p3, 1, 0 }
   0xa   : > { %s1170_s7 = scalar_select %p1033_p2, 1, 0 }
   0xb   : > { %p847_p4 = pneg %p1033_p2  ;;  %s257_s13 = sshll.u32 %s970_s12, 4  ;;  %s1051_s13 = int_to_ptr.vmem [resolvable:$true] %s257_s13 }
   0xc   : > { %s897_s17 = scalar_lea.hbm %s1160_s2, 1024 }
   0xd   : > { %p1047_p5 = pnand %p1039_p3, %p847_p4  ;;  %p898_p6 = scmp.ne.s32.totalorder %s1160_s2, %s897_s17 }
   0xe   : > { %p904_p10 = scmp.lt.u32.totalorder %s897_s17, %s1160_s2 }
   0xf   : > { %p899_p7 = pneg %p1047_p5 }
  0x11   : > { %p900_p8 = pnand %p899_p7, %p898_p6 }
  0x13   : > { %p901_p9 = pneg %p900_p8 }
  0x15   : > { %p906_p11 = pnand %p904_p10, %p901_p9 }
  0x17   : > { %909 = shalt.err (!%p906_p11)
}
  0x18   : > { %s910_s22 = scalar_lea.vmem %s242_s10, 1024  ;;  %p918_p1 = scmp.lt.s32.totalorder %s242_s10, %s242_s10 }
  0x19   : > { %p911_p12 = scmp.ne.s32.totalorder %s242_s10, %s910_s22  ;;  %p919_p4 = scmp.lt.s32.totalorder %s910_s22, %s910_s22 }
  0x1b   : > { %p913_p13 = pnand %p911_p12, %p899_p7  ;;  %p920_p3 = por %p919_p4, %p918_p1 }
  0x1d   : > { %p914_p0 = pneg %p913_p13 }
  0x1f   : > { %p921_p2 = pnand %p920_p3, %p914_p0 }
  0x21   : > { %924 = shalt.err (!%p921_p2)
}
  0x22   : > { %s971_s23 = smov 64   ;;  %s972_s24 = smov 4  }
  0x23   : > { %850 = dma.hbm_to_vmem [thread:$0]  (!%p1047_p5), %s1160_s2, 1024, %s242_s10, [#allocation4], %s971_s23, %s971_s23, %s972_s24  }
  0x24   : > { %s925_s9 = scalar_lea.hbm %s1162_s4, 1024 }
  0x25   : > { %p926_p6 = scmp.ne.s32.totalorder %s1162_s4, %s925_s9  ;;  %p932_p8 = scmp.lt.u32.totalorder %s925_s9, %s1162_s4 }
  0x27   : > { %p928_p2 = pnand %p926_p6, %p899_p7 }
  0x29   : > { %p929_p3 = pneg %p928_p2 }
  0x2b   : > { %p934_p9 = pnand %p932_p8, %p929_p3 }
  0x2d   : > { %937 = shalt.err (!%p934_p9)
}
  0x2e   : > { %s938_s10 = scalar_lea.vmem %s1051_s13, 1024  ;;  %p946_p13 = scmp.lt.s32.totalorder %s1051_s13, %s1051_s13 }
  0x2f   : > { %p939_p10 = scmp.ne.s32.totalorder %s1051_s13, %s938_s10  ;;  %p947_p0 = scmp.lt.s32.totalorder %s938_s10, %s938_s10 }
  0x31   : > { %p941_p11 = pnand %p939_p10, %p899_p7  ;;  %p948_p1 = por %p947_p0, %p946_p13 }
  0x33   : > { %p942_p12 = pneg %p941_p11 }
  0x35   : > { %p949_p4 = pnand %p948_p1, %p942_p12 }
  0x37   : > { %952 = shalt.err (!%p949_p4)
}
  0x38   : > { %853 = dma.hbm_to_vmem [thread:$0]  (!%p1047_p5), %s1162_s4, 1024, %s1051_s13, [#allocation6], %s971_s23, %s971_s23, %s972_s24  }
  0x39   : > { %p1173_p6 = scmp.ne.s32.totalorder %s1170_s7, 0 }
  0x3a   : > { %p1174_p2 = scmp.ne.s32.totalorder (!%p1173_p6), %s1171_s11, 0 }
  0x3b   : > { %291 = sbr.rel (%p1173_p6) target bundleno = 826 (0x33a), region = 52 }
  0x42   : > { %958 = dma.done.wait (%p1174_p2), [#allocation4], 1024  }
  0x43   : > { %960 = vsyncadd (%p1174_p2), [#allocation4], 4294966272 }
  0x44   : > { %962 = dma.done.wait (%p1174_p2), [#allocation6], 1024  }
  0x45   : > { %964 = vsyncadd (%p1174_p2), [#allocation6], 4294966272  ;;  %s755_s14 = sshll.u32 %s746_s30, 1  ;;  %v973_v1 = vmov 1   ;;  %v974_v2 = vmov 0   ;;  %v877_v5 = vld [vmem:[#allocation3] sm:$0xff]   ;;  %v355_v20 = vlaneseq }
  0x46   : > { %875 = vset.pattern.permute.xlu1 %v973_v1  ;;  %874 = vset.pattern.permute.xlu0 %v974_v2  ;;  %p330_p5 = scmp.lt.s32.totalorder %s755_s14, 3  ;;  %v975_v6 = vmov 0.0   ;;  %v878_v7 = vld [vmem:[#allocation3 + $0x8] sm:$0xff]   ;;  %v879_v8 = vld [vmem:[#allocation3 + $0x10] sm:$0xff]   ;;  %vm976_vm0 = vmmov 0   ;;  %v880_v9 = vld [vmem:[#allocation3 + $0x18] sm:$0xff]  }
  0x47   : > { %799 = vmatprep.subr.bf16.mxu0 %v975_v6  ;;  %819 = vmatprep.subr.bf16.mxu1 %v975_v6  ;;  %v881_v10 = vld [vmem:[#allocation3 + $0x20] sm:$0xff]   ;;  %v882_v11 = vld [vmem:[#allocation3 + $0x28] sm:$0xff]   ;;  %v883_v12 = vld [vmem:[#allocation3 + $0x30] sm:$0xff]   ;;  %v356_v21 = vshrl.u32 %v355_v20, 7  ;;  %vm665_vm5 = vcmask 7168  }
  0x48   : > { %s1176_s14 = smov (!%p330_p5, %s755_s14), 3  ;;  %800 = vmatpush3.bf16.msra.mxu0 %v877_v5  ;;  %815 = vmatprep.mubr.msk.bf16.mxu0 %vm976_vm0, %v975_v6  ;;  %v884_v13 = vld [vmem:[#allocation3 + $0x38] sm:$0xff]   ;;  %v885_v14 = vld [vmem:[#allocation5] sm:$0xff]   ;;  %v886_v15 = vld [vmem:[#allocation5 + $0x8] sm:$0xff]  }
  0x49   : > { %s756_s7 = sshll.u32 %s1176_s14, 3  ;;  %801 = vmatprep.subr.bf16.mxu0 %v975_v6  ;;  %835 = vmatprep.mubr.msk.bf16.mxu1 %vm976_vm0, %v975_v6  ;;  %v887_v16 = vld [vmem:[#allocation5 + $0x10] sm:$0xff]   ;;  %v888_v17 = vld [vmem:[#allocation5 + $0x18] sm:$0xff]   ;;  %v889_v18 = vld [vmem:[#allocation5 + $0x20] sm:$0xff]   ;;  %v371_v22 = vsub.s32 1, %v356_v21  ;;  %v357_v23 = vsub.s32 0, %v356_v21 }
  0x4a   : > { %s333_s21 = scalar_lea.vmem %s1158_s0, %s756_s7  ;;  %820 = vmatpush3.bf16.msra.mxu1 %v885_v14  ;;  %v890_v19 = vld [vmem:[#allocation5 + $0x28] sm:$0xff]   ;;  %v344_v24 = vld [vmem:[%s1159_s1] sm:$0x3]  ;;  %s339_s12 = scalar_lea.vmem %s1166_s8, %s756_s7 }
  0x4b   : > { %v342_v3 = vld [vmem:[%s333_s21] sm:$0xff]  ;;  %v343_v4 = vld [vmem:[%s333_s21 + $0x8] sm:$0xff]  ;;  %821 = vmatprep.subr.bf16.mxu1 %v975_v6  ;;  %v372_v25 = vrot.slane %v344_v24, %v371_v22  ;;  %v358_v26 = vrot.slane %v344_v24, %v357_v23 }
  0x4c   : > { %362 = vperm.xlu1 %875, %v342_v3   ;;  %347 = vperm.xlu0 %874, %v342_v3   ;;  %v777_v23 = vld [vmem:[%s1164_s6] ss:$0 sm:$0xff] }
  0x4d   : > { %802 = vmatpush3.bf16.msra.mxu0 %v878_v7  ;;  %v891_v7 = vld [vmem:[#allocation5 + $0x30] sm:$0xff]  }
  0x4e   : > { %803 = vmatprep.subr.bf16.mxu0 %v975_v6  ;;  %822 = vmatpush3.bf16.msra.mxu1 %v886_v15 }
  0x4f   : > { %823 = vmatprep.subr.bf16.mxu1 %v975_v6 }
  0x50   : > { %366 = vperm.xlu1 %875, %v343_v4   ;;  %352 = vperm.xlu0 %874, %v343_v4  }
  0x51   : > { %804 = vmatpush3.bf16.msra.mxu0 %v879_v8  ;;  %v892_v8 = vld [vmem:[#allocation5 + $0x38] sm:$0xff]  }
  0x52   : > { %805 = vmatprep.subr.bf16.mxu0 %v975_v6  ;;  %824 = vmatpush3.bf16.msra.mxu1 %v887_v16 }
  0x53   : > { %825 = vmatprep.subr.bf16.mxu1 %v975_v6 }
  0x54   : > { %876 = vset.pattern.permute.xlu0 %v973_v1 }
  0x55   : > { %806 = vmatpush3.bf16.msra.mxu0 %v880_v9  ;;  %v759_v9 = vld [vmem:[%s1161_s3] ss:$0 sm:$0xff] }
  0x56   : > { %807 = vmatprep.subr.bf16.mxu0 %v975_v6  ;;  %826 = vmatpush3.bf16.msra.mxu1 %v888_v17 }
  0x57   : > { %827 = vmatprep.subr.bf16.mxu1 %v975_v6 }
  0x59   : > { %808 = vmatpush3.bf16.msra.mxu0 %v881_v10 }
  0x5a   : > { %809 = vmatprep.subr.bf16.mxu0 %v975_v6  ;;  %828 = vmatpush3.bf16.msra.mxu1 %v889_v18 }
  0x5b   : > { %829 = vmatprep.subr.bf16.mxu1 %v975_v6 }
  0x5d   : > { %810 = vmatpush3.bf16.msra.mxu0 %v882_v11 }
  0x5e   : > { %811 = vmatprep.subr.bf16.mxu0 %v975_v6  ;;  %830 = vmatpush3.bf16.msra.mxu1 %v890_v19 }
  0x5f   : > { %831 = vmatprep.subr.bf16.mxu1 %v975_v6 }
  0x61   : > { %812 = vmatpush3.bf16.msra.mxu0 %v883_v12 }
  0x62   : > { %813 = vmatprep.subr.bf16.mxu0 %v975_v6  ;;  %832 = vmatpush3.bf16.msra.mxu1 %v891_v7 }
  0x63   : > { %833 = vmatprep.subr.bf16.mxu1 %v975_v6  ;;  %v768_v6 = vld [vmem:[%s1163_s5] ss:$0 sm:$0xff] }
  0x65   : > { %814 = vmatpush3.bf16.msra.mxu0 %v884_v13 }
  0x66   : > { %834 = vmatpush3.bf16.msra.mxu1 %v892_v8 }
  0xcb   : > { %v363_v27 = vpop.permute.xlu1 %362  ;;  %v348_v28 = vpop.permute.xlu0 %347 }
  0xcc   : > { %v373_v29 = vsub.f32 %v363_v27, %v372_v25  ;;  %v359_v30 = vsub.f32 %v348_v28, %v358_v26 }
  0xce   : > { %v377_v31 = vmul.f32 %v373_v29, %v373_v29  ;;  %v375_v32 = vmul.f32 %v359_v30, %v359_v30  ;;  %v778_v30 = vld [vmem:[#allocation2] ss:$0 sm:$0xff] }
  0xcf   : > { %v367_v33 = vpop.permute.xlu1 %366  ;;  %v353_v34 = vpop.permute.xlu0 %352 }
  0xd0   : > { %v379_v35 = vadd.f32 %v377_v31, %v375_v32  ;;  %v374_v36 = vsub.f32 %v367_v33, %v372_v25  ;;  %v360_v37 = vsub.f32 %v353_v34, %v358_v26 }
  0xd2   : > { %893 = vrsqrt.f32 %v379_v35  ;;  %v378_v38 = vmul.f32 %v374_v36, %v374_v36  ;;  %v376_v39 = vmul.f32 %v360_v37, %v360_v37  ;;  %vm383_vm1 = vcmp.eq.f32.partialorder %v379_v35, inf }
  0xd3   : > { %v386_v43 = vand.u32 2147483648, %v379_v35  ;;  %vm385_vm2 = vcmp.eq.f32.partialorder %v379_v35, 0.0  ;;  %v403_v54 = vmul.f32 35.0, %v379_v35 }
  0xd4   : > { %v380_v40 = vadd.f32 %v378_v38, %v376_v39 }
  0xd6   : > { %895 = vrsqrt.f32 %v380_v40  ;;  %vm390_vm3 = vcmp.eq.f32.partialorder %v380_v40, inf  ;;  %v393_v49 = vand.u32 2147483648, %v380_v40  ;;  %vm392_vm4 = vcmp.eq.f32.partialorder %v380_v40, 0.0 }
  0xd7   : > { %v404_v57 = vmul.f32 35.0, %v380_v40 }
  0xdc   : > { %v894_v41 = vpop.eup %893 }
  0xdd   : > { %v382_v42 = vmul.f32 %v894_v41, %v379_v35 }
  0xdf   : > { %v384_v44 = vsel %vm383_vm1, %v379_v35, %v382_v42 }
  0xe0   : > { %v896_v45 = vpop.eup %895  ;;  %v387_v46 = vsel %vm385_vm2, %v386_v43, %v384_v44 }
  0xe1   : > { %v389_v47 = vmul.f32 %v896_v45, %v380_v40  ;;  %v395_v48 = vsub.f32 1.0, %v387_v46  ;;  %v405_v52 = vmul.f32 18.0, %v387_v46 }
  0xe3   : > { %v391_v50 = vsel %vm390_vm3, %v380_v40, %v389_v47  ;;  %v397_v51 = vmul.f32 %v395_v48, %v395_v48  ;;  %v407_v60 = vadd.f32 %v405_v52, %v403_v54 }
  0xe4   : > { %v394_v53 = vsel %vm392_vm4, %v393_v49, %v391_v50 }
  0xe5   : > { %v396_v55 = vsub.f32 1.0, %v394_v53  ;;  %v399_v56 = vmul.f32 %v397_v51, %v397_v51  ;;  %v406_v58 = vmul.f32 18.0, %v394_v53  ;;  %v409_v1 = vadd.f32 3.0, %v407_v60 }
  0xe7   : > { %v398_v59 = vmul.f32 %v396_v55, %v396_v55  ;;  %v408_v61 = vadd.f32 %v406_v58, %v404_v57  ;;  %v401_v63 = vmul.f32 %v399_v56, %v397_v51 }
  0xe9   : > { %v400_v62 = vmul.f32 %v398_v59, %v398_v59  ;;  %v410_v2 = vadd.f32 3.0, %v408_v61  ;;  %v411_v3 = vmul.f32 %v409_v1, %v401_v63 }
  0xeb   : > { %v402_v0 = vmul.f32 %v400_v62, %v398_v59 }
  0xed   : > { %v412_v4 = vmul.f32 %v410_v2, %v402_v0 }
  0xef   : > { %v430_v5 = vpack.c.bf16 %v412_v4, %v411_v3 }
  0xf1   : > { %816 = vmatmul.mubr.bf16.vlgmr.msra.gmra.mrb[0].mxu0 %v430_v5 }
 0x1c4   : > { %v519_v10 = vpop.f32.mrb[0].mxu0 }
 0x1c5   : > { %v520_v11 = vadd.f32 %v759_v9, %v519_v10  ;;  %v817_v12 = vpop.f32.mrb[1].mxu0 }
 0x1c6   : > { %v522_v13 = vpop.f32.mrb[2].mxu0 }
 0x1c7   : > { %v523_v14 = vadd.f32 %v759_v9, %v522_v13  ;;  %v818_v15 = vpop.f32.mrb[3].mxu0  ;;  %v526_v16 = vmax.f32 %v520_v11, 0.0 }
 0x1c9   : > { %v527_v17 = vmax.f32 %v523_v14, 0.0 }
 0x1cb   : > { %v545_v18 = vpack.c.bf16 %v527_v17, %v526_v16 }
 0x1cd   : > { %836 = vmatmul.mubr.bf16.vlgmr.msra.gmra.mrb[0].mxu1 %v545_v18 }
 0x2a0   : > { %v634_v19 = vpop.f32.mrb[0].mxu1 }
 0x2a1   : > { %v635_v20 = vadd.f32 %v768_v6, %v634_v19  ;;  %v837_v21 = vpop.f32.mrb[1].mxu1 }
 0x2a2   : > { %v637_v22 = vpop.f32.mrb[2].mxu1 }
 0x2a3   : > { %v641_v24 = vmax.f32 %v635_v20, 0.0  ;;  %v638_v25 = vadd.f32 %v768_v6, %v637_v22  ;;  %v838_v26 = vpop.f32.mrb[3].mxu1 }
 0x2a5   : > { %v642_v27 = vmax.f32 %v638_v25, 0.0  ;;  %v651_v28 = vmul.f32 %v777_v23, %v641_v24 }
 0x2a7   : > { %653 = vadd.xlane.f32.xlu0 %v651_v28  ;;  %v652_v29 = vmul.f32 %v777_v23, %v642_v27 }
 0x2a9   : > { %655 = vadd.xlane.f32.xlu1 %v652_v29 }
 0x334   : > { %v654_v31 = vpop.xlane.xlu0 %653 }
 0x335   : > { %v663_v32 = vadd.f32 %v778_v30, %v654_v31 }
 0x336   : > { %v656_v33 = vpop.xlane.xlu1 %655 }
 0x337   : > { %666 = vst.msk [vmem:[%s339_s12] sm:$0xff] %vm665_vm5, %v663_v32  ;;  %v664_v34 = vadd.f32 %v778_v30, %v656_v33 }
 0x339   : > { %667 = vst.msk [vmem:[%s339_s12 + $0x8] sm:$0xff] %vm665_vm5, %v664_v34 }
 0x33a PF: > { %s22_s29 = sadd.s32 1, %s967_s29  }
 0x33b   : > { %p19_p7 = scmp.ge.s32.totalorder %s22_s29, 4  }
 0x33d   :  { %21 = sbr.rel (!%p19_p7) target bundleno = 5 (0x5), region = 91 }
 0x344   :  { %690 = vsyncpa [#allocation4], 1 }
 0x345   :  { %692 = vsyncpa [#allocation4 + $0x1], 1 }
 0x346   :  { %693 = vsyncpa [#allocation6], 1 }

</bundles_post_ra>
